<compile_context>
chip_gen: v7x
topology: tpu7x:2x2x1
jax: 0.10.0
libtpu: 0.0.40
codegen_flags: <defaults>
</compile_context>

<pallas_src>
import functools
import math

import jax
import jax.numpy as jnp
from jax.experimental import pallas as pl
from jax.experimental.pallas import tpu as pltpu

# Globals used inside forward() in the PyTorch module.
GLOBAL_HIDDEN_SIZE = 1     # scale = 1/sqrt(1) == 1.0
GLOBAL_DROPOUT_P = 1.0     # torch.dropout(x, 1, True) -> deterministic zeros


# ----------------------------------------------------------------------------
# General-path kernel (dropout_p == 0): full attention math, one invocation.
# ----------------------------------------------------------------------------
def _attn_kernel(xqkv_ref, mask_ref, pa_ref, pb_ref, out_ref, *, B, S, H, O):
    """xqkv_ref: (B*S, 3H)  [q | k | v] concatenated along features
       mask_ref: (B, S, S)
       pa_ref:   (3H+1, 3H) block-diag(wq, wk, wv) stacked on [bq | bk | bv]
       pb_ref:   (H+1, O)   wd stacked on bd
       out_ref:  (B*S, O)   flattened output slab (reshaped in the wrapper)
    """
    N = B * S
    x = xqkv_ref[...]                       # (N, 3H)
    pa = pa_ref[...]
    pb = pb_ref[...]
    w_qkv = pa[:3 * H, :]                   # (3H, 3H) block-diagonal weight
    b_qkv = pa[3 * H:, :]                   # (1, 3H)
    wd = pb[:H, :]                          # (H, O)
    bd = pb[H:, :]                          # (1, O)

    # One MXU pass computes all three projections (block-diagonal weight).
    proj = jnp.dot(x, w_qkv, preferred_element_type=jnp.float32) + b_qkv
    wq = proj[:, 0 * H:1 * H].reshape(B, S, H)
    wk = proj[:, 1 * H:2 * H].reshape(B, S, H)
    wv = proj[:, 2 * H:3 * H].reshape(B, S, H)

    # qk = wq @ wk^T / sqrt(global hidden_size) + attn_mask
    qk = jnp.einsum('bqh,bkh->bqk', wq, wk,
                    preferred_element_type=jnp.float32)
    scale = 1.0 / math.sqrt(GLOBAL_HIDDEN_SIZE)
    if scale != 1.0:                        # compile-time constant; 1.0 here
        qk = qk * scale
    qk = qk + mask_ref[...]

    # Numerically stable softmax over the last axis (matches torch.softmax).
    qk = qk - jnp.max(qk, axis=-1, keepdims=True)
    p = jnp.exp(qk)
    attn = p * pl.reciprocal(jnp.sum(p, axis=-1, keepdims=True), approx=False)

    # output = attn @ wv, then dense1 as a flat 2-D matmul + bias epilogue.
    out = jnp.einsum('bqk,bkh->bqh', attn, wv,
                     preferred_element_type=jnp.float32)
    out = jnp.dot(out.reshape(N, H), wd,
                  preferred_element_type=jnp.float32) + bd
    out_ref[...] = out.astype(out_ref.dtype)


def model_forward(q, k, v, attn_mask, params, dropout_p=GLOBAL_DROPOUT_P):
    """q, k, v: (B, S, H) f32; attn_mask: (B, S, S) f32 -> (B, S, 4) f32."""
    B, S, H = q.shape
    O = params["wd"].shape[1]

    if dropout_p >= 1.0:
        # torch.dropout(attn, 1, True) zeroes the attention weights, so the
        # output is exactly dense1's bias.  Pure broadcast -- no kernel
        # launch; XLA fuses this into whatever consumes it.
        return jnp.broadcast_to(params["bd"].reshape(1, 1, O), (B, S, O))

    if dropout_p > 0.0:
        # TODO(synk): stochastic dropout (0 < p < 1) needs pltpu.prng_seed /
        # pltpu.prng_random_bits Bernoulli masking; plain 1/(1-p) rescaling is
        # not equivalent, so refuse rather than silently return biased results.
        raise NotImplementedError("0 < dropout_p < 1 not implemented")

    N = B * S
    f32 = jnp.float32

    # Pack inputs: [q | k | v] along features -> one (N, 3H) operand so a
    # single block-diagonal MXU matmul performs all three projections.
    xqkv = jnp.concatenate(
        [q.reshape(N, H), k.reshape(N, H), v.reshape(N, H)], axis=-1)

    # Parameter slab A: block-diag(wq, wk, wv) stacked on [bq | bk | bv].
    w_blk = jnp.zeros((3 * H, 3 * H), f32)
    w_blk = w_blk.at[0 * H:1 * H, 0 * H:1 * H].set(params["wq"])
    w_blk = w_blk.at[1 * H:2 * H, 1 * H:2 * H].set(params["wk"])
    w_blk = w_blk.at[2 * H:3 * H, 2 * H:3 * H].set(params["wv"])
    b_qkv = jnp.concatenate([params["bq"], params["bk"], params["bv"]], axis=-1)
    pa = jnp.concatenate([w_blk, b_qkv], axis=0)            # (3H+1, 3H)

    # Parameter slab B: wd stacked on bd.
    pb = jnp.concatenate([params["wd"], params["bd"]], axis=0)   # (H+1, O)

    vmem = pl.BlockSpec(memory_space=pltpu.MemorySpace.VMEM)
    kernel = functools.partial(_attn_kernel, B=B, S=S, H=H, O=O)

    out_flat = pl.pallas_call(
        kernel,
        out_shape=jax.ShapeDtypeStruct((N, O), f32),
        in_specs=[vmem, vmem, vmem, vmem],
        out_specs=vmem,
    )(xqkv, attn_mask, pa, pb)
    return out_flat.reshape(B, S, O)


def _reference(q, k, v, attn_mask, params, dropout_p):
    """Plain-JAX reference mirroring the PyTorch forward()."""
    wq = q @ params["wq"] + params["bq"]
    wk = k @ params["wk"] + params["bk"]
    wv = v @ params["wv"] + params["bv"]
    qk = wq @ jnp.swapaxes(wk, -2, -1) / math.sqrt(GLOBAL_HIDDEN_SIZE)
    qk = qk + attn_mask
    attn = jax.nn.softmax(qk, axis=-1)
    # torch.dropout(x, 1.0, True) deterministically returns zeros; p == 0 is
    # the identity.  (0 < p < 1 is stochastic and not covered here.)
    attn = attn * (0.0 if dropout_p >= 1.0 else 1.0)
    out = attn @ wv
    return out @ params["wd"] + params["bd"]


if __name__ == "__main__":
    B, S, H, O = 2, 8, 15, 4   # dense1 = Linear(15, 4) => hidden must be 15

    key = jax.random.PRNGKey(0)
    ks = jax.random.split(key, 12)

    # Deterministic parameter init (Linear weights stored pre-transposed: (in, out)).
    params = {
        "wq": jax.random.normal(ks[0], (H, H), jnp.float32) * 0.1,
        "bq": jax.random.normal(ks[1], (1, H), jnp.float32) * 0.1,
        "wk": jax.random.normal(ks[2], (H, H), jnp.float32) * 0.1,
        "bk": jax.random.normal(ks[3], (1, H), jnp.float32) * 0.1,
        "wv": jax.random.normal(ks[4], (H, H), jnp.float32) * 0.1,
        "bv": jax.random.normal(ks[5], (1, H), jnp.float32) * 0.1,
        "wd": jax.random.normal(ks[6], (H, O), jnp.float32) * 0.1,
        "bd": jax.random.normal(ks[7], (1, O), jnp.float32) * 0.1,
    }

    q = jax.random.normal(ks[8], (B, S, H), jnp.float32)
    k = jax.random.normal(ks[9], (B, S, H), jnp.float32)
    v = jax.random.normal(ks[10], (B, S, H), jnp.float32)
    attn_mask = jax.random.normal(ks[11], (B, S, S), jnp.float32)

    # 1) Faithful module semantics: global dropout_p == 1 -> bias broadcast
    #    (handled entirely in the wrapper; no kernel launch).
    out_fast = jax.block_until_ready(model_forward(q, k, v, attn_mask, params))
    ref_fast = _reference(q, k, v, attn_mask, params, GLOBAL_DROPOUT_P)
    assert out_fast.shape == (B, S, O), out_fast.shape
    assert jnp.allclose(out_fast, ref_fast, atol=1e-5, rtol=1e-5)

    # 2) General attention path (dropout_p == 0) exercises the Pallas kernel.
    out_gen = jax.block_until_ready(
        model_forward(q, k, v, attn_mask, params, dropout_p=0.0))
    ref_gen = _reference(q, k, v, attn_mask, params, 0.0)
    assert out_gen.shape == (B, S, O), out_gen.shape
    assert jnp.allclose(out_gen, ref_gen, atol=1e-5, rtol=1e-5)

    print("KERNEL_OK")
</pallas_src>

<mosaic_0001>
module attributes {stable_mosaic.version = 11 : i64} {
  func.func @_attn_kernel(%arg0: memref<16x45xf32, #tpu.memory_space<vmem>>, %arg1: memref<2x8x8xf32, #tpu.memory_space<vmem>>, %arg2: memref<46x45xf32, #tpu.memory_space<vmem>>, %arg3: memref<16x4xf32, #tpu.memory_space<vmem>>, %arg4: memref<16x4xf32, #tpu.memory_space<vmem>>) attributes {dimension_semantics = [], scalar_prefetch = 0 : i64, scratch_operands = 0 : i64, tpu.core_type = #tpu.core_type<tc>} {
    %c0 = arith.constant 0 : index
    %c0_0 = arith.constant 0 : index
    %0 = vector.load %arg0[%c0, %c0_0] : memref<16x45xf32, #tpu.memory_space<vmem>>, vector<16x45xf32>
    %c0_1 = arith.constant 0 : index
    %c0_2 = arith.constant 0 : index
    %1 = vector.load %arg2[%c0_1, %c0_2] : memref<46x45xf32, #tpu.memory_space<vmem>>, vector<46x45xf32>
    %c0_3 = arith.constant 0 : index
    %c0_4 = arith.constant 0 : index
    %2 = vector.load %arg3[%c0_3, %c0_4] : memref<16x4xf32, #tpu.memory_space<vmem>>, vector<16x4xf32>
    %3 = vector.extract_strided_slice %1 {offsets = [0, 0], sizes = [45, 45], strides = [1, 1]} : vector<46x45xf32> to vector<45x45xf32>
    %4 = vector.extract_strided_slice %1 {offsets = [45, 0], sizes = [1, 45], strides = [1, 1]} : vector<46x45xf32> to vector<1x45xf32>
    %5 = vector.extract_strided_slice %2 {offsets = [0, 0], sizes = [15, 4], strides = [1, 1]} : vector<16x4xf32> to vector<15x4xf32>
    %6 = vector.extract_strided_slice %2 {offsets = [15, 0], sizes = [1, 4], strides = [1, 1]} : vector<16x4xf32> to vector<1x4xf32>
    %cst = arith.constant dense<0.000000e+00> : vector<16x45xf32>
    %7 = tpu.matmul %0, %3, %cst {dimension_numbers = #tpu.dot_dimension_numbers<[1], [0], [0], [1], [0, 0, 1, 1], [], []>} : vector<16x45xf32>, vector<45x45xf32>, vector<16x45xf32> -> vector<16x45xf32>
    %8 = vector.broadcast %4 : vector<1x45xf32> to vector<16x45xf32>
    %9 = arith.addf %7, %8 : vector<16x45xf32>
    %10 = vector.extract_strided_slice %9 {offsets = [0, 0], sizes = [16, 15], strides = [1, 1]} : vector<16x45xf32> to vector<16x15xf32>
    %11 = vector.shape_cast %10 : vector<16x15xf32> to vector<2x8x15xf32>
    %12 = vector.extract_strided_slice %9 {offsets = [0, 15], sizes = [16, 15], strides = [1, 1]} : vector<16x45xf32> to vector<16x15xf32>
    %13 = vector.shape_cast %12 : vector<16x15xf32> to vector<2x8x15xf32>
    %14 = vector.extract_strided_slice %9 {offsets = [0, 30], sizes = [16, 15], strides = [1, 1]} : vector<16x45xf32> to vector<16x15xf32>
    %15 = vector.shape_cast %14 : vector<16x15xf32> to vector<2x8x15xf32>
    "tpu.trace_start"() <{level = 10 : i32, message = "bqh,bkh->bqk"}> : () -> ()
    %cst_5 = arith.constant dense<0.000000e+00> : vector<2x8x8xf32>
    %16 = tpu.matmul %11, %13, %cst_5 {dimension_numbers = #tpu.dot_dimension_numbers<[2], [2], [1], [1], [0, 0, 0, 1, 1, 1], [0], [0]>} : vector<2x8x15xf32>, vector<2x8x15xf32>, vector<2x8x8xf32> -> vector<2x8x8xf32>
    "tpu.trace_stop"() : () -> ()
    %c0_6 = arith.constant 0 : index
    %c0_7 = arith.constant 0 : index
    %c0_8 = arith.constant 0 : index
    %17 = vector.load %arg1[%c0_6, %c0_7, %c0_8] : memref<2x8x8xf32, #tpu.memory_space<vmem>>, vector<2x8x8xf32>
    %18 = arith.addf %16, %17 : vector<2x8x8xf32>
    %cst_9 = arith.constant dense<0xFF800000> : vector<2x8xf32>
    %19 = vector.multi_reduction <maximumf>, %18, %cst_9 [2] : vector<2x8x8xf32> to vector<2x8xf32>
    %20 = vector.shape_cast %19 : vector<2x8xf32> to vector<2x8x1xf32>
    %21 = vector.broadcast %20 : vector<2x8x1xf32> to vector<2x8x8xf32>
    %22 = arith.subf %18, %21 : vector<2x8x8xf32>
    %23 = math.exp %22 : vector<2x8x8xf32>
    %cst_10 = arith.constant dense<0.000000e+00> : vector<2x8xf32>
    %24 = vector.multi_reduction <add>, %23, %cst_10 [2] : vector<2x8x8xf32> to vector<2x8xf32>
    %25 = vector.shape_cast %24 : vector<2x8xf32> to vector<2x8x1xf32>
    %26 = tpu.reciprocal %25 : vector<2x8x1xf32> -> vector<2x8x1xf32>
    %27 = vector.broadcast %26 : vector<2x8x1xf32> to vector<2x8x8xf32>
    %28 = arith.mulf %23, %27 : vector<2x8x8xf32>
    "tpu.trace_start"() <{level = 10 : i32, message = "bqk,bkh->bqh"}> : () -> ()
    %cst_11 = arith.constant dense<0.000000e+00> : vector<2x8x15xf32>
    %29 = tpu.matmul %28, %15, %cst_11 {dimension_numbers = #tpu.dot_dimension_numbers<[2], [1], [1], [2], [0, 0, 0, 1, 1, 2], [0], [0]>} : vector<2x8x8xf32>, vector<2x8x15xf32>, vector<2x8x15xf32> -> vector<2x8x15xf32>
    "tpu.trace_stop"() : () -> ()
    %30 = vector.shape_cast %29 : vector<2x8x15xf32> to vector<16x15xf32>
    %cst_12 = arith.constant dense<0.000000e+00> : vector<16x4xf32>
    %31 = tpu.matmul %30, %5, %cst_12 {dimension_numbers = #tpu.dot_dimension_numbers<[1], [0], [0], [1], [0, 0, 1, 1], [], []>} : vector<16x15xf32>, vector<15x4xf32>, vector<16x4xf32> -> vector<16x4xf32>
    %32 = vector.broadcast %6 : vector<1x4xf32> to vector<16x4xf32>
    %33 = arith.addf %31, %32 : vector<16x4xf32>
    %c0_13 = arith.constant 0 : index
    %c0_14 = arith.constant 0 : index
    %34 = vector.load %arg4[%c0_13, %c0_14] : memref<16x4xf32, #tpu.memory_space<vmem>>, vector<16x4xf32>
    tpu.vector_store %arg4[%c0_13, %c0_14], %33 {strides = array<i32>} : memref<16x4xf32, #tpu.memory_space<vmem>>, vector<16x4xf32>,
    return
  }
}

</mosaic_0001>

<bundles_post_ra>
// kernel: tpu_custom_call.1
= control target key start
LH: loop header
LB: loop body
LE: loop exit
PB: predicated region body
PF: predicated region fallthrough
CT: control target
= control target key end

     0   :  { %9 = vsyncpa [#allocation3], 0  ;;  %s834_s0 = inlined_call_operand.vmem [shape: f32[16,45], index: 0, kind: input, shape index: {}]   ;;  %s835_s1 = inlined_call_operand.hbm [shape: f32[2,8,8], index: 1, kind: input, shape index: {}]   ;;  %s836_s2 = inlined_call_operand.hbm [shape: f32[46,45], index: 2, kind: input, shape index: {}]   ;;  %s837_s3 = inlined_call_operand.vmem [shape: f32[16,4], index: 3, kind: input, shape index: {}]   ;;  %s838_s4 = inlined_call_operand.vmem [shape: f32[16,4], index: 4, kind: output, shape index: {}]  }
   0x1   :  { %10 = vsyncpa [#allocation5], 0  ;;  %s734_s15 = smov [#allocation2]   ;;  %s686_s19 = scalar_lea.hbm %s835_s1, 256 }
   0x2   :  { %s18_s16 = sshll.u32 %s734_s15, 4  ;;  %p687_p0 = scmp.ne.s32.totalorder %s835_s1, %s686_s19  ;;  %s19_s16 = int_to_ptr.vmem [resolvable:$true] %s18_s16 }
   0x3   :  { %p690_p1 = scmp.lt.u32.totalorder %s686_s19, %s835_s1 }
   0x5   :  { %p692_p2 = pnand %p690_p1, %p687_p0 }
   0x7   :  { %695 = shalt.err (!%p692_p2)
}
   0x8   :  { %s696_s24 = scalar_lea.vmem %s19_s16, 256  ;;  %p701_p4 = scmp.lt.s32.totalorder %s19_s16, %s19_s16 }
   0x9   :  { %p697_p3 = scmp.ne.s32.totalorder %s19_s16, %s696_s24  ;;  %p702_p5 = scmp.lt.s32.totalorder %s696_s24, %s696_s24 }
   0xb   :  { %p703_p6 = por %p702_p5, %p701_p4 }
   0xd   :  { %p704_p7 = pnand %p703_p6, %p697_p3 }
   0xf   :  { %707 = shalt.err (!%p704_p7)
}
  0x10   :  { %s735_s25 = smov 128   ;;  %s736_s26 = smov 8  }
  0x11   :  { %24 = dma.hbm_to_vmem [thread:$0]  %s835_s1, 256, %s19_s16, [#allocation3], %s735_s25, %s735_s25, %s736_s26  }
  0x12   :  { %s737_s29 = smov [#allocation4]   ;;  %s708_s7 = scalar_lea.hbm %s836_s2, 768 }
  0x13   :  { %s30_s30 = sshll.u32 %s737_s29, 4  ;;  %p709_p8 = scmp.ne.s32.totalorder %s836_s2, %s708_s7  ;;  %s31_s30 = int_to_ptr.vmem [resolvable:$true] %s30_s30 }
  0x14   :  { %p712_p9 = scmp.lt.u32.totalorder %s708_s7, %s836_s2 }
  0x16   :  { %p714_p10 = pnand %p712_p9, %p709_p8 }
  0x18   :  { %717 = shalt.err (!%p714_p10)
}
  0x19   :  { %s718_s12 = scalar_lea.vmem %s31_s30, 768  ;;  %p723_p12 = scmp.lt.s32.totalorder %s31_s30, %s31_s30 }
  0x1a   :  { %p719_p11 = scmp.ne.s32.totalorder %s31_s30, %s718_s12  ;;  %p724_p13 = scmp.lt.s32.totalorder %s718_s12, %s718_s12 }
  0x1c   :  { %p725_p0 = por %p724_p13, %p723_p12 }
  0x1e   :  { %p726_p1 = pnand %p725_p0, %p719_p11 }
  0x20   :  { %729 = shalt.err (!%p726_p1)
}
  0x21   :  { %36 = dma.hbm_to_vmem [thread:$0]  %s836_s2, 768, %s31_s30, [#allocation5], %s735_s25, %s735_s25, %s736_s26  }
  0x22   :  { %730 = dma.done.wait [#allocation3], 256  }
  0x23   :  { %731 = vsyncadd [#allocation3], 4294967040 }
  0x24   :  { %732 = dma.done.wait [#allocation5], 768  }
  0x25   :  { %733 = vsyncadd [#allocation5], 4294966528  ;;  %v47_v0 = vld [vmem:[#allocation4] sm:$0xff]  ;;  %v48_v1 = vld [vmem:[#allocation4 + $0x8] sm:$0xff]  ;;  %vm59_vm0 = vcmask 367616   ;;  %vm66_vm1 = vcmask 1044480   ;;  %v55_v12 = vlaneseq }
  0x26   :  { %v49_v2 = vld [vmem:[#allocation4 + $0x10] sm:$0xff]  ;;  %v649_v3 = vpack.c.bf16 %v48_v1, %v47_v0  ;;  %v50_v4 = vld [vmem:[#allocation4 + $0x18] sm:$0xff]  ;;  %v51_v6 = vld [vmem:[#allocation4 + $0x20] sm:$0xff]  ;;  %vm738_vm2 = vmmov 1   ;;  %v739_v11 = vmov 0.0   ;;  %vm740_vm4 = vmmov 0  }
  0x27   :  { %v653_v5 = vpack.c.bf16 %v50_v4, %v49_v2  ;;  %v52_v7 = vld [vmem:[#allocation4 + $0x28] sm:$0x3f]  ;;  %v45_v8 = vld [vmem:[%s834_s0] sm:$0xff]  ;;  %vm658_vm3 = vmpackc.low %vm66_vm1, %vm738_vm2  ;;  %622 = vmatprep.subr.mxu1 %v739_v11  ;;  %v801_v13 = vshrl.u32 %v55_v12, 7  ;;  %624 = vmatprep.mubr.msk.f32.mxu1 %vm740_vm4, %v739_v11  ;;  %vm150_vm5 = vcmask 121856   ;;  %vm302_vm6 = vcmask 64512  }
  0x28   :  { %650 = vmatprep.subr.bf16.mxu0 %v649_v3  ;;  %619 = vmatprep.mubr.msk.f32.mxu0 %vm59_vm0, %v45_v8  ;;  %v657_v9 = vpack.c.bf16 %v52_v7, %v51_v6  ;;  %v46_v10 = vld [vmem:[%s834_s0 + $0x8] sm:$0xff]  ;;  %s741_s0 = smov 113   ;;  %v145_v22 = vld [vmem:[#allocation2] sm:$0xff]  ;;  %s742_s17 = smov 98   ;;  %vm487_vm7 = vcmask 1046528   ;;  %vm566_vm9 = vcmask 31744  }
  0x29   :  { %652 = vmatpush3.bf16.msra.mxu0 %v649_v3  ;;  %v57_v14 = vsub.s32 5, %v801_v13  ;;  %v146_v26 = vld [vmem:[#allocation2 + $0x8] sm:$0xff]  ;;  %v53_v50 = vld [vmem:[%s837_s3] sm:$0xff]  ;;  %vm664_vm8 = vmpackc.low %vm487_vm7, %vm738_vm2  ;;  %v479_v57 = vsub.s32 7, %v801_v13 }
  0x2a   :  { %654 = vmatprep.subr.bf16.mxu0 %v653_v5  ;;  %v54_v51 = vld [vmem:[%s837_s3 + $0x8] sm:$0xff] }
  0x2b   :  { %v58_v15 = vrot.slane %v52_v7, %v57_v14  ;;  %v663_v52 = vpack.c.bf16 %v54_v51, %v53_v50  ;;  %v480_v58 = vrot.slane %v54_v51, %v479_v57 }
  0x2d   :  { %656 = vmatpush3.bf16.msra.mxu0 %v653_v5 }
  0x2e   :  { %659 = vmatprep.subr.msk.bf16.mxu0 %vm658_vm3, %v657_v9 }
  0x31   :  { %662 = vmatpush3.bf16.msk.msra.mxu0 %vm658_vm3, %v657_v9 }
  0x32   :  { %637 = vmatprep.subr.mxu0 %v739_v11 }
  0x34   :  { %620 = vmatmul.mubr.msk.f32.vlgmr.msra.gmra.mrb[0].mxu0 %vm59_vm0, %v46_v10 }
  0x35   :  { %639 = vmatprep.mubr.msk.f32.mxu0 %vm740_vm4, %v739_v11 }
 0x107   :  { %v621_v16 = vpop.f32.mrb[0].mxu0 }
 0x108   :  { %v142_v17 = vadd.f32 %v621_v16, %v58_v15  ;;  %v136_v18 = vpop.f32.mrb[1].mxu0 }
 0x109   :  { %v137_v19 = vadd.f32 %v136_v18, %v58_v15 }
 0x10b   :  { %148 = vrot.lane.b32.xlu0 %v137_v19, %s741_s0 }
 0x10f   :  { %226 = vrot.lane.b32.xlu0 %v142_v17, %s741_s0 }
 0x17d   :  { %v149_v20 = vpop.permute.xlu0 %148 }
 0x17e   :  { %623 = vmatpush3.xpose.msk.msra.mxu1 %vm150_vm5, %v149_v20 }
 0x17f   :  { %627 = vmatprep.subr.mxu1 %v739_v11 }
 0x181   :  { %625 = vmatmul.mubr.msk.f32.vlgmr.msra.gmra.mrb[0].mxu1 %vm150_vm5, %v137_v19  ;;  %v227_v21 = vpop.permute.xlu0 %226 }
 0x182   :  { %628 = vmatpush3.xpose.msk.msra.mxu1 %vm150_vm5, %v227_v21  ;;  %629 = vmatprep.mubr.msk.f32.mxu1 %vm740_vm4, %v739_v11 }
 0x183   :  { %632 = vmatprep.subr.mxu1 %v739_v11 }
 0x185   :  { %630 = vmatmul.mubr.msk.f32.vlgmr.msra.gmra.mrb[2].mxu1 %vm150_vm5, %v142_v17 }
 0x186   :  { %634 = vmatprep.mubr.msk.f32.mxu1 %vm740_vm4, %v739_v11 }
 0x254   :  { %v221_v23 = vpop.f32.mrb[0].mxu1 }
 0x255   :  { %v222_v24 = vadd.f32 %v221_v23, %v145_v22  ;;  %v626_v25 = vpop.f32.mrb[1].mxu1 }
 0x257   :  { %v303_v27 = vsel %vm302_vm6, %v222_v24, -inf }
 0x258   :  { %304 = vmax.xlane.f32.xlu1 %v303_v27  ;;  %v298_v28 = vpop.f32.mrb[2].mxu1 }
 0x259   :  { %v299_v29 = vadd.f32 %v298_v28, %v146_v26  ;;  %v631_v30 = vpop.f32.mrb[3].mxu1 }
 0x25b   :  { %v306_v31 = vsel %vm302_vm6, %v299_v29, -inf }
 0x25c   :  { %307 = vmax.xlane.f32.xlu1 %v306_v31 }
 0x26d   :  { %325 = vrot.lane.b32.xlu1 %v137_v19, %s742_s17 }
 0x2e5   :  { %v305_v32 = vpop.xlane.xlu1 %304 }
 0x2e6   :  { %v309_v33 = vsub.f32 %v222_v24, %v305_v32 }
 0x2e8   :  { %v311_v34 = vmul.f32 1.442695, %v309_v33 }
 0x2e9   :  { %v308_v35 = vpop.xlane.xlu1 %307 }
 0x2ea   :  { %678 = vpow2.f32 %v311_v34  ;;  %v310_v36 = vsub.f32 %v299_v29, %v308_v35 }
 0x2ec   :  { %v313_v37 = vmul.f32 1.442695, %v310_v36 }
 0x2ed   :  { %v326_v38 = vpop.permute.xlu1 %325 }
 0x2ee   :  { %680 = vpow2.f32 %v313_v37  ;;  %633 = vmatpush3.msra.mxu1 %v326_v38 }
 0x2ef   :  { %665 = vmatprep.subr.msk.bf16.mxu1 %vm664_vm8, %v663_v52 }
 0x2f4   :  { %v679_v39 = vpop.eup %678 }
 0x2f5   :  { %v315_v40 = vsel %vm302_vm6, %v679_v39, 0.0 }
 0x2f6   :  { %316 = vadd.xlane.f32.xlu0 %v315_v40 }
 0x2f8   :  { %v681_v41 = vpop.eup %680 }
 0x2f9   :  { %v318_v42 = vsel %vm302_vm6, %v681_v41, 0.0 }
 0x2fa   :  { %319 = vadd.xlane.f32.xlu1 %v318_v42 }
 0x30b   :  { %401 = vrot.lane.b32.xlu1 %v142_v17, %s742_s17 }
 0x383   :  { %v317_v43 = vpop.xlane.xlu0 %316 }
 0x384   :  { %682 = vrcp.f32 %v317_v43 }
 0x387   :  { %v320_v44 = vpop.xlane.xlu1 %319 }
 0x388   :  { %684 = vrcp.f32 %v320_v44 }
 0x38b   :  { %v402_v45 = vpop.permute.xlu1 %401 }
 0x38c   :  { %638 = vmatpush3.msra.mxu0 %v402_v45 }
 0x38e   :  { %v683_v46 = vpop.eup %682 }
 0x38f   :  { %v323_v47 = vmul.f32 %v683_v46, %v679_v39 }
 0x391   :  { %635 = vmatmul.mubr.msk.f32.vlgmr.msra.gmra.mrb[4].mxu1 %vm302_vm6, %v323_v47 }
 0x392   :  { %v685_v48 = vpop.eup %684  ;;  %668 = vmatpush3.bf16.msk.msra.mxu1 %vm664_vm8, %v663_v52 }
 0x393   :  { %v324_v49 = vmul.f32 %v685_v48, %v681_v41 }
 0x395   :  { %640 = vmatmul.mubr.msk.f32.vlgmr.msra.gmra.mrb[2].mxu0 %vm302_vm6, %v324_v49 }
 0x464   :  { %v397_v53 = vpop.f32.mrb[4].mxu1 }
 0x465   :  { %v636_v54 = vpop.f32.mrb[5].mxu1  ;;  %646 = vmatprep.mubr.msk.f32.mxu1 %vm150_vm5, %v397_v53 }
 0x468   :  { %v473_v55 = vpop.f32.mrb[2].mxu0 }
 0x469   :  { %v641_v56 = vpop.f32.mrb[3].mxu0  ;;  %647 = vmatmul.mubr.msk.f32.vlgmr.msra.gmra.mrb[6].mxu1 %vm150_vm5, %v473_v55 }
 0x53c   :  { %v648_v59 = vpop.f32.mrb[6].mxu1 }
 0x53d   :  { %v563_v60 = vadd.f32 %v648_v59, %v480_v58  ;;  %v557_v61 = vpop.f32.mrb[7].mxu1 }
 0x53e   :  { %v558_v62 = vadd.f32 %v557_v61, %v480_v58 }
 0x53f   :  { %568 = vst.msk [vmem:[%s838_s4 + $0x8] sm:$0xff] %vm566_vm9, %v563_v60 }
 0x540   :  { %567 = vst.msk [vmem:[%s838_s4] sm:$0xff] %vm566_vm9, %v558_v62 }
 0x541   :  { %573 = vsyncpa [#allocation3], 1 }
 0x542   :  { %574 = vsyncpa [#allocation5], 1 }

</bundles_post_ra>
